<compile_context>
chip_gen: v7x
topology: tpu7x:2x2x1
jax: 0.10.0
libtpu: 0.0.40
codegen_flags: <defaults>
</compile_context>

<pallas_src>
import math
import numpy as np
import jax
import jax.numpy as jnp
from jax.experimental import pallas as pl
from jax.experimental.pallas import tpu as pltpu

# ---- Hyperparameters mirroring Decoder_mirror.__init__ (small, consistent shapes) ----
EMBED_DIM = 256          # != 768 -> x_dim = int(sqrt(256)) = 16
LATENT_DIM = 32
SEQ_SIZE = 8
HID_CH = 32              # hid_ch in the module
KERNEL_SIZE = (3, 15, 15)
BATCH = 2

K4SEQ, K4X, K4Y = KERNEL_SIZE
X_DIM = int(math.sqrt(EMBED_DIM))                 # 16
Y_DIM = int(int(EMBED_DIM) / X_DIM)               # 16
NX = int(X_DIM - K4X + 1)                         # 2
NY = int(Y_DIM - K4Y + 1)                         # 2
NSEQ = int(SEQ_SIZE - K4SEQ + 1)                  # 6
FEAT = HID_CH * NSEQ * NX * NY                    # 768  (lin1 output features)
OUT_P = SEQ_SIZE * X_DIM * Y_DIM                  # 2048 (flattened output)

CQ = HID_CH * NX * NY                             # 128: features per input-depth slab (permuted order)
PLANE = X_DIM * Y_DIM                             # 256: one output depth plane


# --------------------------- Pallas kernel ---------------------------
def _decoder_kernel(z_ref, w1t_ref, b1_ref, wstack_ref, cbias_ref, out_ref):
    # Linear + bias + ReLU, all f32 (tiny: (B,32) @ (32,768)).  Columns of w1t are pre-permuted to
    # (qd, c, qh, qw) order, so h[:, qd*128:(qd+1)*128] is the full feature slab of input depth qd.
    h = jnp.dot(z_ref[...], w1t_ref[...], preferred_element_type=jnp.float32)
    h = jnp.maximum(h + b1_ref[...], 0.0).astype(jnp.bfloat16)          # (B, 768) bf16 for the MXU
    cb = cbias_ref[0]                                                    # ConvT bias scalar (SMEM)

    # Weight-direct transposed conv: output depth d receives contributions from input depths
    # qd in [max(0,d-2), min(5,d)], each through kernel plane kd = d - qd.  wstack rows are the
    # stacked kernel planes in order [kd=2 ; kd=1 ; kd=0] (128 rows each, spatial shifts folded in),
    # so both the h slab range and the wstack row range are contiguous and 128-aligned.
    for d in range(SEQ_SIZE):                                            # 8 static iterations
        qd_lo = max(0, d - (K4SEQ - 1))
        qd_hi = min(NSEQ - 1, d)
        n = qd_hi - qd_lo + 1                                            # 1..3 contributing slabs
        r0 = (K4SEQ - 1 - (d - qd_lo)) * CQ                              # first wstack row block
        hd = h[:, qd_lo * CQ:(qd_hi + 1) * CQ]                           # (B, n*128) lane-aligned
        wd = wstack_ref[r0:r0 + n * CQ, :]                               # (n*128, 256) row-aligned
        od = jnp.dot(hd, wd, preferred_element_type=jnp.float32)         # (B, 256) f32 accum
        out_ref[:, d * PLANE:(d + 1) * PLANE] = od + cb                  # lane-dense aligned store


def decoder_mirror_forward(z, w1t_perm, b1_perm, wstack_bf16, conv_bias):
    """z:(B,L) f32 -> (B, 1, SEQ_SIZE, X_DIM, Y_DIM) f32 (PyTorch NCDHW)."""
    B, L = z.shape

    cost = pl.CostEstimate(
        flops=2 * B * L * FEAT + 2 * B * CQ * PLANE * (NSEQ * K4SEQ),
        transcendentals=0,
        bytes_accessed=int(z.size * 4 + w1t_perm.size * 4 + b1_perm.size * 4
                           + wstack_bf16.size * 2 + B * OUT_P * 4 + 4),
    )

    out_flat = pl.pallas_call(
        _decoder_kernel,
        out_shape=jax.ShapeDtypeStruct((B, OUT_P), jnp.float32),
        in_specs=[
            pl.BlockSpec(memory_space=pltpu.MemorySpace.VMEM),   # z          (B, L)     f32
            pl.BlockSpec(memory_space=pltpu.MemorySpace.VMEM),   # lin1 W^T   (L, FEAT)  f32 (permuted)
            pl.BlockSpec(memory_space=pltpu.MemorySpace.VMEM),   # lin1 bias  (1, FEAT)  f32 (permuted)
            pl.BlockSpec(memory_space=pltpu.MemorySpace.VMEM),   # wstack     (384, 256) bf16
            pl.BlockSpec(memory_space=pltpu.MemorySpace.SMEM),   # convT bias (1,)       f32
        ],
        out_specs=pl.BlockSpec(memory_space=pltpu.MemorySpace.VMEM),
        cost_estimate=cost,
    )(z, w1t_perm, b1_perm, wstack_bf16, conv_bias)

    return out_flat.reshape(B, 1, SEQ_SIZE, X_DIM, Y_DIM)


# ------------------- Parameter setup (plain JAX / numpy glue) -------------------
def init_params(key):
    k1, k2, k3, k4 = jax.random.split(key, 4)
    # nn.Linear(latent_dim, FEAT): weight (FEAT, L), bias (FEAT,), U(-1/sqrt(L), 1/sqrt(L))
    lin_bound = 1.0 / math.sqrt(LATENT_DIM)
    w1 = jax.random.uniform(k1, (FEAT, LATENT_DIM), jnp.float32, -lin_bound, lin_bound)
    b1 = jax.random.uniform(k2, (FEAT,), jnp.float32, -lin_bound, lin_bound)
    # nn.ConvTranspose3d(HID_CH, 1, kernel): weight (in=HID_CH, out=1, kD, kH, kW), bias (1,)
    conv_bound = 1.0 / math.sqrt(1 * K4SEQ * K4X * K4Y)
    conv_w = jax.random.uniform(k3, (HID_CH, 1, K4SEQ, K4X, K4Y), jnp.float32,
                                -conv_bound, conv_bound)
    conv_b = jax.random.uniform(k4, (1,), jnp.float32, -conv_bound, conv_bound)
    return w1, b1, conv_w, conv_b


def permute_linear(w1, b1):
    """Reorder lin1 output features from PyTorch's (c, qd, qh, qw) to (qd, c, qh, qw) so each
    input-depth slab of h is a contiguous 128-lane block inside the kernel."""
    w = np.asarray(jax.device_get(w1)).reshape(HID_CH, NSEQ, NX * NY, LATENT_DIM)
    w = np.transpose(w, (1, 0, 2, 3)).reshape(FEAT, LATENT_DIM)          # rows (qd, c, qh, qw)
    b = np.asarray(jax.device_get(b1)).reshape(HID_CH, NSEQ, NX * NY)
    b = np.transpose(b, (1, 0, 2)).reshape(1, FEAT)
    return jnp.asarray(np.ascontiguousarray(w.T)), jnp.asarray(b)        # (L, FEAT), (1, FEAT)


def build_wstack(conv_w):
    """Stacked kernel-plane operator (K4SEQ*128, 256):
       rows: kd blocks in order [kd=2 ; kd=1 ; kd=0], each block indexed (c, qh, qw);
       cols: output spatial plane (x, y) with the 15x15 kernel placed at offset (qh, qw).
       For output depth d:  out[:, d] = h[:, qd_lo*128:(qd_hi+1)*128] @ wstack[r0:r0+n*128]."""
    w = np.asarray(jax.device_get(conv_w))                               # (HID_CH, 1, kD, kH, kW)
    planes = np.zeros((K4SEQ, HID_CH, NX, NY, X_DIM, Y_DIM), np.float32)
    for kd in range(K4SEQ):
        for qh in range(NX):
            for qw in range(NY):
                planes[kd, :, qh, qw, qh:qh + K4X, qw:qw + K4Y] = w[:, 0, kd]
    planes = planes.reshape(K4SEQ, CQ, PLANE)                            # (3, 128, 256)
    wstack = np.concatenate([planes[kd] for kd in range(K4SEQ - 1, -1, -1)], axis=0)
    return jnp.asarray(wstack)                                           # (384, 256) f32


# ------------------- Pure-JAX reference (for correctness check) -------------------
def reference_forward(z, w1, b1, conv_w, conv_b):
    h = jnp.maximum(z @ w1.T + b1, 0.0)
    x = h.reshape(z.shape[0], HID_CH, NSEQ, NX, NY)
    # ConvTranspose3d(stride=1, pad=0) == full correlation with spatially-flipped kernel.
    k = jnp.flip(conv_w, axis=(2, 3, 4))                 # (in, out, kD, kH, kW)
    k = jnp.transpose(k, (1, 0, 2, 3, 4))                # (out, in, kD, kH, kW)
    y = jax.lax.conv_general_dilated(
        x, k, window_strides=(1, 1, 1),
        padding=[(K4SEQ - 1, K4SEQ - 1), (K4X - 1, K4X - 1), (K4Y - 1, K4Y - 1)],
        dimension_numbers=("NCDHW", "OIDHW", "NCDHW"),
        precision=jax.lax.Precision.HIGHEST)
    return y + conv_b.reshape(1, 1, 1, 1, 1)


if __name__ == "__main__":
    key = jax.random.PRNGKey(0)
    kz, kp = jax.random.split(key)

    z = jax.random.normal(kz, (BATCH, LATENT_DIM), jnp.float32)
    w1, b1, conv_w, conv_b = init_params(kp)

    w1t_perm, b1_perm = permute_linear(w1, b1)           # (L, FEAT) f32, (1, FEAT) f32
    wstack_bf16 = build_wstack(conv_w).astype(jnp.bfloat16)   # (384, 256) bf16, the only streamed operand

    out = decoder_mirror_forward(z, w1t_perm, b1_perm, wstack_bf16, conv_b)
    out = jax.block_until_ready(out)

    ref = jax.block_until_ready(reference_forward(z, w1, b1, conv_w, conv_b))

    assert out.shape == (BATCH, 1, SEQ_SIZE, X_DIM, Y_DIM), out.shape
    # bf16 stacked-kernel operator with f32 h and f32 accumulation: relaxed atol vs. pure-f32 path.
    np.testing.assert_allclose(np.asarray(out), np.asarray(ref), rtol=1e-2, atol=2e-3)

    print("KERNEL_OK")
</pallas_src>

<mosaic_0001>
module attributes {stable_mosaic.version = 11 : i64} {
  func.func @_decoder_kernel(%arg0: memref<2x32xf32, #tpu.memory_space<vmem>>, %arg1: memref<32x768xf32, #tpu.memory_space<vmem>>, %arg2: memref<1x768xf32, #tpu.memory_space<vmem>>, %arg3: memref<384x256xbf16, #tpu.memory_space<vmem>>, %arg4: memref<1xf32, #tpu.memory_space<smem>>, %arg5: memref<2x2048xf32, #tpu.memory_space<vmem>>) attributes {dimension_semantics = [], scalar_prefetch = 0 : i64, scratch_operands = 0 : i64, tpu.core_type = #tpu.core_type<tc>} {
    %c0 = arith.constant 0 : index
    %c0_0 = arith.constant 0 : index
    %0 = vector.load %arg0[%c0, %c0_0] : memref<2x32xf32, #tpu.memory_space<vmem>>, vector<2x32xf32>
    %c0_1 = arith.constant 0 : index
    %c0_2 = arith.constant 0 : index
    %1 = vector.load %arg1[%c0_1, %c0_2] : memref<32x768xf32, #tpu.memory_space<vmem>>, vector<32x768xf32>
    %cst = arith.constant dense<0.000000e+00> : vector<2x768xf32>
    %2 = tpu.matmul %0, %1, %cst {dimension_numbers = #tpu.dot_dimension_numbers<[1], [0], [0], [1], [0, 0, 1, 1], [], []>} : vector<2x32xf32>, vector<32x768xf32>, vector<2x768xf32> -> vector<2x768xf32>
    %c0_3 = arith.constant 0 : index
    %c0_4 = arith.constant 0 : index
    %3 = vector.load %arg2[%c0_3, %c0_4] : memref<1x768xf32, #tpu.memory_space<vmem>>, vector<1x768xf32>
    %4 = vector.broadcast %3 : vector<1x768xf32> to vector<2x768xf32>
    %5 = arith.addf %2, %4 : vector<2x768xf32>
    %cst_5 = arith.constant 0.000000e+00 : f32
    %6 = vector.broadcast %cst_5 : f32 to vector<2x768xf32>
    %7 = arith.maximumf %5, %6 : vector<2x768xf32>
    %8 = arith.truncf %7 : vector<2x768xf32> to vector<2x768xbf16>
    %c0_6 = arith.constant 0 : index
    %9 = memref.load %arg4[%c0_6] : memref<1xf32, #tpu.memory_space<smem>>
    %10 = vector.extract_strided_slice %8 {offsets = [0, 0], sizes = [2, 128], strides = [1, 1]} : vector<2x768xbf16> to vector<2x128xbf16>
    %c256 = arith.constant 256 : index
    %c0_7 = arith.constant 0 : index
    %11 = vector.load %arg3[%c256, %c0_7] : memref<384x256xbf16, #tpu.memory_space<vmem>>, vector<128x256xbf16>
    %cst_8 = arith.constant dense<0.000000e+00> : vector<2x256xf32>
    %12 = tpu.matmul %10, %11, %cst_8 {dimension_numbers = #tpu.dot_dimension_numbers<[1], [0], [0], [1], [0, 0, 1, 1], [], []>} : vector<2x128xbf16>, vector<128x256xbf16>, vector<2x256xf32> -> vector<2x256xf32>
    %13 = vector.broadcast %9 : f32 to vector<2x256xf32>
    %14 = arith.addf %12, %13 : vector<2x256xf32>
    %c0_9 = arith.constant 0 : index
    %c0_10 = arith.constant 0 : index
    %15 = vector.load %arg5[%c0_9, %c0_10] : memref<2x2048xf32, #tpu.memory_space<vmem>>, vector<2x256xf32>
    tpu.vector_store %arg5[%c0_9, %c0_10], %14 {strides = array<i32>} : memref<2x2048xf32, #tpu.memory_space<vmem>>, vector<2x256xf32>,
    %16 = vector.extract_strided_slice %8 {offsets = [0, 0], sizes = [2, 256], strides = [1, 1]} : vector<2x768xbf16> to vector<2x256xbf16>
    %c128 = arith.constant 128 : index
    %c0_11 = arith.constant 0 : index
    %17 = vector.load %arg3[%c128, %c0_11] : memref<384x256xbf16, #tpu.memory_space<vmem>>, vector<256x256xbf16>
    %cst_12 = arith.constant dense<0.000000e+00> : vector<2x256xf32>
    %18 = tpu.matmul %16, %17, %cst_12 {dimension_numbers = #tpu.dot_dimension_numbers<[1], [0], [0], [1], [0, 0, 1, 1], [], []>} : vector<2x256xbf16>, vector<256x256xbf16>, vector<2x256xf32> -> vector<2x256xf32>
    %19 = vector.broadcast %9 : f32 to vector<2x256xf32>
    %20 = arith.addf %18, %19 : vector<2x256xf32>
    %c0_13 = arith.constant 0 : index
    %c256_14 = arith.constant 256 : index
    %21 = vector.load %arg5[%c0_13, %c256_14] : memref<2x2048xf32, #tpu.memory_space<vmem>>, vector<2x256xf32>
    tpu.vector_store %arg5[%c0_13, %c256_14], %20 {strides = array<i32>} : memref<2x2048xf32, #tpu.memory_space<vmem>>, vector<2x256xf32>,
    %22 = vector.extract_strided_slice %8 {offsets = [0, 0], sizes = [2, 384], strides = [1, 1]} : vector<2x768xbf16> to vector<2x384xbf16>
    %c0_15 = arith.constant 0 : index
    %c0_16 = arith.constant 0 : index
    %23 = vector.load %arg3[%c0_15, %c0_16] : memref<384x256xbf16, #tpu.memory_space<vmem>>, vector<384x256xbf16>
    %cst_17 = arith.constant dense<0.000000e+00> : vector<2x256xf32>
    %24 = tpu.matmul %22, %23, %cst_17 {dimension_numbers = #tpu.dot_dimension_numbers<[1], [0], [0], [1], [0, 0, 1, 1], [], []>} : vector<2x384xbf16>, vector<384x256xbf16>, vector<2x256xf32> -> vector<2x256xf32>
    %25 = vector.broadcast %9 : f32 to vector<2x256xf32>
    %26 = arith.addf %24, %25 : vector<2x256xf32>
    %c0_18 = arith.constant 0 : index
    %c512 = arith.constant 512 : index
    %27 = vector.load %arg5[%c0_18, %c512] : memref<2x2048xf32, #tpu.memory_space<vmem>>, vector<2x256xf32>
    tpu.vector_store %arg5[%c0_18, %c512], %26 {strides = array<i32>} : memref<2x2048xf32, #tpu.memory_space<vmem>>, vector<2x256xf32>,
    %28 = vector.extract_strided_slice %8 {offsets = [0, 128], sizes = [2, 384], strides = [1, 1]} : vector<2x768xbf16> to vector<2x384xbf16>
    %c0_19 = arith.constant 0 : index
    %c0_20 = arith.constant 0 : index
    %29 = vector.load %arg3[%c0_19, %c0_20] : memref<384x256xbf16, #tpu.memory_space<vmem>>, vector<384x256xbf16>
    %cst_21 = arith.constant dense<0.000000e+00> : vector<2x256xf32>
    %30 = tpu.matmul %28, %29, %cst_21 {dimension_numbers = #tpu.dot_dimension_numbers<[1], [0], [0], [1], [0, 0, 1, 1], [], []>} : vector<2x384xbf16>, vector<384x256xbf16>, vector<2x256xf32> -> vector<2x256xf32>
    %31 = vector.broadcast %9 : f32 to vector<2x256xf32>
    %32 = arith.addf %30, %31 : vector<2x256xf32>
    %c0_22 = arith.constant 0 : index
    %c768 = arith.constant 768 : index
    %33 = vector.load %arg5[%c0_22, %c768] : memref<2x2048xf32, #tpu.memory_space<vmem>>, vector<2x256xf32>
    tpu.vector_store %arg5[%c0_22, %c768], %32 {strides = array<i32>} : memref<2x2048xf32, #tpu.memory_space<vmem>>, vector<2x256xf32>,
    %34 = vector.extract_strided_slice %8 {offsets = [0, 256], sizes = [2, 384], strides = [1, 1]} : vector<2x768xbf16> to vector<2x384xbf16>
    %c0_23 = arith.constant 0 : index
    %c0_24 = arith.constant 0 : index
    %35 = vector.load %arg3[%c0_23, %c0_24] : memref<384x256xbf16, #tpu.memory_space<vmem>>, vector<384x256xbf16>
    %cst_25 = arith.constant dense<0.000000e+00> : vector<2x256xf32>
    %36 = tpu.matmul %34, %35, %cst_25 {dimension_numbers = #tpu.dot_dimension_numbers<[1], [0], [0], [1], [0, 0, 1, 1], [], []>} : vector<2x384xbf16>, vector<384x256xbf16>, vector<2x256xf32> -> vector<2x256xf32>
    %37 = vector.broadcast %9 : f32 to vector<2x256xf32>
    %38 = arith.addf %36, %37 : vector<2x256xf32>
    %c0_26 = arith.constant 0 : index
    %c1024 = arith.constant 1024 : index
    %39 = vector.load %arg5[%c0_26, %c1024] : memref<2x2048xf32, #tpu.memory_space<vmem>>, vector<2x256xf32>
    tpu.vector_store %arg5[%c0_26, %c1024], %38 {strides = array<i32>} : memref<2x2048xf32, #tpu.memory_space<vmem>>, vector<2x256xf32>,
    %40 = vector.extract_strided_slice %8 {offsets = [0, 384], sizes = [2, 384], strides = [1, 1]} : vector<2x768xbf16> to vector<2x384xbf16>
    %c0_27 = arith.constant 0 : index
    %c0_28 = arith.constant 0 : index
    %41 = vector.load %arg3[%c0_27, %c0_28] : memref<384x256xbf16, #tpu.memory_space<vmem>>, vector<384x256xbf16>
    %cst_29 = arith.constant dense<0.000000e+00> : vector<2x256xf32>
    %42 = tpu.matmul %40, %41, %cst_29 {dimension_numbers = #tpu.dot_dimension_numbers<[1], [0], [0], [1], [0, 0, 1, 1], [], []>} : vector<2x384xbf16>, vector<384x256xbf16>, vector<2x256xf32> -> vector<2x256xf32>
    %43 = vector.broadcast %9 : f32 to vector<2x256xf32>
    %44 = arith.addf %42, %43 : vector<2x256xf32>
    %c0_30 = arith.constant 0 : index
    %c1280 = arith.constant 1280 : index
    %45 = vector.load %arg5[%c0_30, %c1280] : memref<2x2048xf32, #tpu.memory_space<vmem>>, vector<2x256xf32>
    tpu.vector_store %arg5[%c0_30, %c1280], %44 {strides = array<i32>} : memref<2x2048xf32, #tpu.memory_space<vmem>>, vector<2x256xf32>,
    %46 = vector.extract_strided_slice %8 {offsets = [0, 512], sizes = [2, 256], strides = [1, 1]} : vector<2x768xbf16> to vector<2x256xbf16>
    %c0_31 = arith.constant 0 : index
    %c0_32 = arith.constant 0 : index
    %47 = vector.load %arg3[%c0_31, %c0_32] : memref<384x256xbf16, #tpu.memory_space<vmem>>, vector<256x256xbf16>
    %cst_33 = arith.constant dense<0.000000e+00> : vector<2x256xf32>
    %48 = tpu.matmul %46, %47, %cst_33 {dimension_numbers = #tpu.dot_dimension_numbers<[1], [0], [0], [1], [0, 0, 1, 1], [], []>} : vector<2x256xbf16>, vector<256x256xbf16>, vector<2x256xf32> -> vector<2x256xf32>
    %49 = vector.broadcast %9 : f32 to vector<2x256xf32>
    %50 = arith.addf %48, %49 : vector<2x256xf32>
    %c0_34 = arith.constant 0 : index
    %c1536 = arith.constant 1536 : index
    %51 = vector.load %arg5[%c0_34, %c1536] : memref<2x2048xf32, #tpu.memory_space<vmem>>, vector<2x256xf32>
    tpu.vector_store %arg5[%c0_34, %c1536], %50 {strides = array<i32>} : memref<2x2048xf32, #tpu.memory_space<vmem>>, vector<2x256xf32>,
    %52 = vector.extract_strided_slice %8 {offsets = [0, 640], sizes = [2, 128], strides = [1, 1]} : vector<2x768xbf16> to vector<2x128xbf16>
    %c0_35 = arith.constant 0 : index
    %c0_36 = arith.constant 0 : index
    %53 = vector.load %arg3[%c0_35, %c0_36] : memref<384x256xbf16, #tpu.memory_space<vmem>>, vector<128x256xbf16>
    %cst_37 = arith.constant dense<0.000000e+00> : vector<2x256xf32>
    %54 = tpu.matmul %52, %53, %cst_37 {dimension_numbers = #tpu.dot_dimension_numbers<[1], [0], [0], [1], [0, 0, 1, 1], [], []>} : vector<2x128xbf16>, vector<128x256xbf16>, vector<2x256xf32> -> vector<2x256xf32>
    %55 = vector.broadcast %9 : f32 to vector<2x256xf32>
    %56 = arith.addf %54, %55 : vector<2x256xf32>
    %c0_38 = arith.constant 0 : index
    %c1792 = arith.constant 1792 : index
    %57 = vector.load %arg5[%c0_38, %c1792] : memref<2x2048xf32, #tpu.memory_space<vmem>>, vector<2x256xf32>
    tpu.vector_store %arg5[%c0_38, %c1792], %56 {strides = array<i32>} : memref<2x2048xf32, #tpu.memory_space<vmem>>, vector<2x256xf32>,
    return
  }
}

</mosaic_0001>

<bundles_post_ra>
// kernel: tpu_custom_call.1
= control target key start
LH: loop header
LB: loop body
LE: loop exit
PB: predicated region body
PF: predicated region fallthrough
CT: control target
= control target key end

     0   :  { %11 = vsyncpa [#allocation4], 0  ;;  %s3761_s0 = inlined_call_operand.vmem [shape: f32[2,32], index: 0, kind: input, shape index: {}]   ;;  %s3762_s1 = inlined_call_operand.hbm [shape: f32[32,768], index: 1, kind: input, shape index: {}]   ;;  %s3763_s2 = inlined_call_operand.vmem [shape: f32[1,768], index: 2, kind: input, shape index: {}]   ;;  %s3764_s3 = inlined_call_operand.hbm [shape: bf16[384,256], index: 3, kind: input, shape index: {}]   ;;  %s3765_s4 = inlined_call_operand.<no memory space> [shape: f32[1], index: 4, kind: input, shape index: {}]   ;;  %s3766_s5 = inlined_call_operand.hbm [shape: f32[2,2048], index: 5, kind: output, shape index: {}]  }
   0x1   :  { %12 = vsyncpa [#allocation7], 0 }
   0x2   :  { %13 = vsyncpa [#allocation5], 0  ;;  %s3243_s18 = smov [#allocation3]   ;;  %s3171_s22 = scalar_lea.hbm %s3762_s1, 3072 }
   0x3   :  { %s21_s19 = sshll.u32 %s3243_s18, 4  ;;  %p3172_p0 = scmp.ne.s32.totalorder %s3762_s1, %s3171_s22  ;;  %s22_s19 = int_to_ptr.vmem [resolvable:$true] %s21_s19 }
   0x4   :  { %p3175_p1 = scmp.lt.u32.totalorder %s3171_s22, %s3762_s1 }
   0x6   :  { %p3177_p2 = pnand %p3175_p1, %p3172_p0 }
   0x8   :  { %3180 = shalt.err (!%p3177_p2)
}
   0x9   :  { %s3181_s27 = scalar_lea.vmem %s22_s19, 3072  ;;  %p3186_p4 = scmp.lt.s32.totalorder %s22_s19, %s22_s19 }
   0xa   :  { %p3182_p3 = scmp.ne.s32.totalorder %s22_s19, %s3181_s27  ;;  %p3187_p5 = scmp.lt.s32.totalorder %s3181_s27, %s3181_s27 }
   0xc   :  { %p3188_p6 = por %p3187_p5, %p3186_p4 }
   0xe   :  { %p3189_p7 = pnand %p3188_p6, %p3182_p3 }
  0x10   :  { %3192 = shalt.err (!%p3189_p7)
}
  0x11   :  { %s3244_s28 = smov 768   ;;  %s3245_s29 = smov 48  }
  0x12   :  { %27 = dma.hbm_to_vmem [thread:$0]  %s3762_s1, 3072, %s22_s19, [#allocation4], %s3244_s28, %s3244_s28, %s3245_s29  }
  0x13   :  { %s3246_s7 = smov [#allocation6]   ;;  %s3193_s11 = scalar_lea.hbm %s3764_s3, 6144 }
  0x14   :  { %s35_s8 = sshll.u32 %s3246_s7, 4  ;;  %p3194_p8 = scmp.ne.s32.totalorder %s3764_s3, %s3193_s11  ;;  %s36_s8 = int_to_ptr.vmem [resolvable:$true] %s35_s8 }
  0x15   :  { %p3197_p9 = scmp.lt.u32.totalorder %s3193_s11, %s3764_s3 }
  0x17   :  { %p3199_p10 = pnand %p3197_p9, %p3194_p8 }
  0x19   :  { %3202 = shalt.err (!%p3199_p10)
}
  0x1a   :  { %s3203_s16 = scalar_lea.vmem %s36_s8, 6144  ;;  %p3208_p12 = scmp.lt.s32.totalorder %s36_s8, %s36_s8 }
  0x1b   :  { %p3204_p11 = scmp.ne.s32.totalorder %s36_s8, %s3203_s16  ;;  %p3209_p13 = scmp.lt.s32.totalorder %s3203_s16, %s3203_s16 }
  0x1d   :  { %p3210_p0 = por %p3209_p13, %p3208_p12 }
  0x1f   :  { %p3211_p1 = pnand %p3210_p0, %p3204_p11 }
  0x21   :  { %3214 = shalt.err (!%p3211_p1)
}
  0x22   :  { %s3247_s1 = smov 128   ;;  %s3248_s17 = smov 8  }
  0x23   :  { %41 = dma.hbm_to_vmem [thread:$0]  %s3764_s3, 6144, %s36_s8, [#allocation7], %s3247_s1, %s3247_s1, %s3248_s17  }
  0x24   :  { %3237 = dma.done.wait [#allocation4], 3072  }
  0x25   :  { %3238 = vsyncadd [#allocation4], 4294964224 }
  0x26   :  { %3239 = dma.done.wait [#allocation7], 6144  }
  0x27   :  { %3240 = vsyncadd [#allocation7], 4294961152  ;;  %v3249_v0 = vmov 0.0   ;;  %v53_v1 = vld [vmem:[#allocation3 + $0x8] sm:$0xff]  ;;  %v59_v2 = vld [vmem:[#allocation3 + $0x38] sm:$0xff]  ;;  %vm108_vm0 = vcmask 261120  }
  0x28   :  { %176 = vmatprep.mubr.f32.mxu0 %v3249_v0  ;;  %247 = vmatprep.mubr.f32.mxu1 %v3249_v0  ;;  %v52_v3 = vld [vmem:[#allocation3] sm:$0xff]  ;;  %v2970_v4 = vpack.c.bf16 %v59_v2, %v53_v1  ;;  %v58_v5 = vld [vmem:[#allocation3 + $0x30] sm:$0xff]  ;;  %v65_v6 = vld [vmem:[#allocation3 + $0x68] sm:$0xff] }
  0x29   :  { %v71_v7 = vld [vmem:[#allocation3 + $0x98] sm:$0xff]  ;;  %v2972_v8 = vpack.c.bf16 %v58_v5, %v52_v3  ;;  %v64_v10 = vld [vmem:[#allocation3 + $0x60] sm:$0xff]  ;;  %v70_v11 = vld [vmem:[#allocation3 + $0x90] sm:$0xff] }
  0x2a   :  { %v2974_v9 = vpack.c.bf16 %v71_v7, %v65_v6  ;;  %2971 = vmatprep.subr.bf16.mxu0 %v2970_v4  ;;  %v55_v12 = vld [vmem:[#allocation3 + $0x18] sm:$0xff]  ;;  %v61_v13 = vld [vmem:[#allocation3 + $0x48] sm:$0xff]  ;;  %v54_v14 = vld [vmem:[#allocation3 + $0x10] sm:$0xff]  ;;  %v2976_v15 = vpack.c.bf16 %v70_v11, %v64_v10  ;;  %v3250_v7 = vmov 0  }
  0x2b   :  { %2973 = vmatpush1.bf16.msra.mxu0 %v2972_v8  ;;  %v2978_v16 = vpack.c.bf16 %v61_v13, %v55_v12  ;;  %v60_v17 = vld [vmem:[#allocation3 + $0x40] sm:$0xff]  ;;  %v67_v18 = vld [vmem:[#allocation3 + $0x78] sm:$0xff]  ;;  %v73_v19 = vld [vmem:[#allocation3 + $0xa8] sm:$0xff]  ;;  %v78_v8 = vlaneseq }
  0x2c   :  { %2975 = vmatprep.subr.bf16.mxu0 %v2974_v9  ;;  %v2980_v20 = vpack.c.bf16 %v60_v17, %v54_v14  ;;  %v2982_v21 = vpack.c.bf16 %v73_v19, %v67_v18  ;;  %v66_v22 = vld [vmem:[#allocation3 + $0x70] sm:$0xff]  ;;  %v72_v23 = vld [vmem:[#allocation3 + $0xa0] sm:$0xff]  ;;  %v57_v24 = vld [vmem:[#allocation3 + $0x28] sm:$0xff] }
  0x2d   :  { %2979 = vmatprep.subr.bf16.mxu1 %v2978_v16  ;;  %v63_v25 = vld [vmem:[#allocation3 + $0x58] sm:$0xff]  ;;  %v56_v26 = vld [vmem:[#allocation3 + $0x20] sm:$0xff]  ;;  %v62_v27 = vld [vmem:[#allocation3 + $0x50] sm:$0xff]  ;;  %v2984_v28 = vpack.c.bf16 %v72_v23, %v66_v22  ;;  %v3429_v9 = vshrl.u32 %v78_v8, 7 }
  0x2e   :  { %2981 = vmatpush1.bf16.msra.mxu1 %v2980_v20  ;;  %v2986_v29 = vpack.c.bf16 %v63_v25, %v57_v24  ;;  %v69_v30 = vld [vmem:[#allocation3 + $0x88] sm:$0xff]  ;;  %v75_v31 = vld [vmem:[#allocation3 + $0xb8] sm:$0xff]  ;;  %v51_v32 = vld [vmem:[%s3761_s0] sm:$0x3]  ;;  %v2988_v33 = vpack.c.bf16 %v62_v27, %v56_v26 }
  0x2f   :  { %2977 = vmatpush1.bf16.msra.mxu0 %v2976_v15  ;;  %2983 = vmatprep.subr.bf16.mxu1 %v2982_v21  ;;  %v2990_v34 = vpack.c.bf16 %v75_v31, %v69_v30  ;;  %v68_v35 = vld [vmem:[#allocation3 + $0x80] sm:$0xff]  ;;  %v74_v36 = vld [vmem:[#allocation3 + $0xb0] sm:$0xff]  ;;  %v80_v10 = vsub.s32 0, %v3429_v9  ;;  %v84_v12 = vsub.s32 1, %v3429_v9  ;;  %v88_v13 = vsub.s32 2, %v3429_v9 }
  0x30   :  { %2987 = vmatprep.subr.bf16.mxu0 %v2986_v29  ;;  %v2992_v37 = vpack.c.bf16 %v74_v36, %v68_v35  ;;  %v3310_v38 = vld [vmem:[#allocation6 + $0x84] ss:$8 sps:$4 sm:$0xff]   ;;  %v3313_v39 = vld [vmem:[#allocation6 + $0x80] ss:$8 sps:$4 sm:$0xff]   ;;  %v3316_v40 = vld [vmem:[#allocation6 + $0x94] ss:$8 sps:$4 sm:$0xff]  }
  0x31   :  { %v3318_v41 = vld [vmem:[#allocation6 + $0x90] ss:$8 sps:$4 sm:$0xff]   ;;  %v3321_v42 = vld [vmem:[#allocation6 + $0x100] ss:$8 sps:$4 sm:$0xff]   ;;  %v3324_v43 = vld [vmem:[#allocation6 + $0x104] ss:$8 sps:$4 sm:$0xff]  }
  0x32   :  { %2671 = vmatmul.mubr.msk.f32.vlgmr.msra.gmra.mrb[0].mxu0 %vm108_vm0, %v51_v32  ;;  %2985 = vmatpush1.bf16.msra.mxu1 %v2984_v28  ;;  %v3327_v44 = vld [vmem:[#allocation6 + $0xa4] ss:$8 sps:$4 sm:$0xff]   ;;  %v3329_v45 = vld [vmem:[#allocation6 + $0x114] ss:$8 sps:$4 sm:$0xff]   ;;  %v3331_v46 = vld [vmem:[#allocation6 + $0xa0] ss:$8 sps:$4 sm:$0xff]  }
  0x33   :  { %2989 = vmatpush1.bf16.msra.mxu0 %v2988_v33  ;;  %318 = vmatprep.mubr.f32.mxu0 %v3249_v0  ;;  %v3335_v47 = vld [vmem:[#allocation6 + $0x110] ss:$8 sps:$4 sm:$0xff]   ;;  %v3339_v48 = vld [vmem:[#allocation6 + $0x124] ss:$8 sps:$4 sm:$0xff]   ;;  %v3342_v49 = vld [vmem:[#allocation6 + $0xb4] ss:$8 sps:$4 sm:$0xff]  }
  0x34   :  { %2991 = vmatprep.subr.bf16.mxu0 %v2990_v34  ;;  %435 = vmatprep.subr.bf16.mxu1 %v3324_v43  ;;  %v3344_v50 = vld [vmem:[#allocation6 + $0xb0] ss:$8 sps:$4 sm:$0xff]   ;;  %v3347_v51 = vld [vmem:[#allocation6 + $0x120] ss:$8 sps:$4 sm:$0xff]   ;;  %v3350_v52 = vld [vmem:[#allocation6 + $0xc4] ss:$8 sps:$4 sm:$0xff]  }
  0x35   :  { %2672 = vmatmul.mubr.msk.f32.vlgmr.msra.gmra.mrb[0].mxu1 %vm108_vm0, %v51_v32  ;;  %v3353_v53 = vld [vmem:[#allocation6 + $0x134] ss:$8 sps:$4 sm:$0xff]   ;;  %v3356_v54 = vld [vmem:[#allocation6 + $0x130] ss:$8 sps:$4 sm:$0xff]   ;;  %v3358_v55 = vld [vmem:[#allocation6 + $0xc0] ss:$8 sps:$4 sm:$0xff]  }
  0x36   :  { %436 = vmatpush1.bf16.msra.mxu1 %v3321_v42  ;;  %v3360_v56 = vld [vmem:[#allocation6 + $0x144] ss:$8 sps:$4 sm:$0xff]   ;;  %v3362_v57 = vld [vmem:[#allocation6 + $0xd4] ss:$8 sps:$4 sm:$0xff]   ;;  %v3368_v58 = vld [vmem:[#allocation6 + $0x140] ss:$8 sps:$4 sm:$0xff]   ;;  %467 = vmatprep.mubr.bf16.mxu1 %v3250_v7 }
  0x37   :  { %2993 = vmatpush1.bf16.msra.mxu0 %v2992_v37  ;;  %437 = vmatprep.subr.bf16.mxu1 %v3329_v45  ;;  %v3370_v59 = vld [vmem:[#allocation6 + $0xd0] ss:$8 sps:$4 sm:$0xff]   ;;  %v3372_v60 = vld [vmem:[#allocation6 + $0x154] ss:$8 sps:$4 sm:$0xff]   ;;  %v3374_v61 = vld [vmem:[#allocation6 + $0xe4] ss:$8 sps:$4 sm:$0xff]  }
  0x38   :  { %680 = vmatprep.subr.bf16.mxu0 %v3310_v38  ;;  %v3380_v62 = vld [vmem:[#allocation6 + $0x150] ss:$8 sps:$4 sm:$0xff]   ;;  %v3382_v63 = vld [vmem:[#allocation6 + $0xe0] ss:$8 sps:$4 sm:$0xff]   ;;  %v3384_v0 = vld [vmem:[#allocation6 + $0x164] ss:$8 sps:$4 sm:$0xff]  }
  0x39   :  { %v3386_v1 = vld [vmem:[#allocation6 + $0xf4] ss:$8 sps:$4 sm:$0xff]   ;;  %v3392_v2 = vld [vmem:[#allocation6 + $0x160] ss:$8 sps:$4 sm:$0xff]   ;;  %v3394_v3 = vld [vmem:[#allocation6 + $0xf0] ss:$8 sps:$4 sm:$0xff]  }
  0x3a   :  { %2673 = vmatmul.mubr.msk.f32.vlgmr.msra.gmra.mrb[2].mxu0 %vm108_vm0, %v51_v32  ;;  %438 = vmatpush1.bf16.msra.mxu1 %v3335_v47  ;;  %v3416_v4 = vld [vmem:[#allocation6 + $0x174] ss:$8 sps:$4 sm:$0xff]   ;;  %v3418_v5 = vld [vmem:[#allocation6 + $0x170] ss:$8 sps:$4 sm:$0xff]   ;;  %v3424_v6 = vld [vmem:[#allocation6 + $0x4] ss:$8 sps:$4 sm:$0xff]  }
  0x3b   :  { %681 = vmatpush1.bf16.msra.mxu0 %v3313_v39  ;;  %439 = vmatprep.subr.bf16.mxu1 %v3339_v48  ;;  %v3435_v11 = vld [vmem:[%s3763_s2] sm:$0x3f]  ;;  %v3450_v29 = vld [vmem:[#allocation6 + $0x14] ss:$8 sps:$4 sm:$0xff]   ;;  %v3455_v31 = vld [vmem:[#allocation6 + $0x10] ss:$8 sps:$4 sm:$0xff]  }
  0x3c   :  { %682 = vmatprep.subr.bf16.mxu0 %v3316_v40  ;;  %v81_v14 = vrot.slane %v3435_v11, %v80_v10  ;;  %v85_v15 = vrot.slane %v3435_v11, %v84_v12  ;;  %v89_v17 = vrot.slane %v3435_v11, %v88_v13  ;;  %v3442_v24 = vld [vmem:[#allocation6] ss:$8 sps:$4 sm:$0xff]   ;;  %v3461_v33 = vld [vmem:[#allocation6 + $0x24] ss:$8 sps:$4 sm:$0xff]   ;;  %v3471_v35 = vld [vmem:[#allocation6 + $0x34] ss:$8 sps:$4 sm:$0xff]  }
  0x3d   :  { %v3468_v34 = vld [vmem:[#allocation6 + $0x20] ss:$8 sps:$4 sm:$0xff]   ;;  %v3476_v36 = vld [vmem:[#allocation6 + $0x30] ss:$8 sps:$4 sm:$0xff]   ;;  %v3479_v37 = vld [vmem:[#allocation6 + $0x44] ss:$8 sps:$4 sm:$0xff]  }
  0x3e   :  { %440 = vmatpush1.bf16.msra.mxu1 %v3347_v51  ;;  %v3484_v8 = vld [vmem:[#allocation6 + $0x40] ss:$8 sps:$4 sm:$0xff]   ;;  %v3487_v10 = vld [vmem:[#allocation6 + $0x54] ss:$8 sps:$4 sm:$0xff]   ;;  %v3492_v12 = vld [vmem:[#allocation6 + $0x50] ss:$8 sps:$4 sm:$0xff]  }
  0x3f   :  { %683 = vmatpush1.bf16.msra.mxu0 %v3318_v41  ;;  %441 = vmatprep.subr.bf16.mxu1 %v3353_v53  ;;  %v3495_v13 = vld [vmem:[#allocation6 + $0x64] ss:$8 sps:$4 sm:$0xff]  }
  0x40   :  { %684 = vmatprep.subr.bf16.mxu0 %v3327_v44 }
  0x42   :  { %442 = vmatpush1.bf16.msra.mxu1 %v3356_v54 }
  0x43   :  { %685 = vmatpush1.bf16.msra.mxu0 %v3331_v46  ;;  %443 = vmatprep.subr.bf16.mxu1 %v3360_v56 }
  0x44   :  { %686 = vmatprep.subr.bf16.mxu0 %v3342_v49 }
  0x46   :  { %444 = vmatpush1.bf16.msra.mxu1 %v3368_v58 }
  0x47   :  { %687 = vmatpush1.bf16.msra.mxu0 %v3344_v50  ;;  %445 = vmatprep.subr.bf16.mxu1 %v3372_v60 }
  0x48   :  { %688 = vmatprep.subr.bf16.mxu0 %v3350_v52 }
  0x4a   :  { %446 = vmatpush1.bf16.msra.mxu1 %v3380_v62 }
  0x4b   :  { %689 = vmatpush1.bf16.msra.mxu0 %v3358_v55  ;;  %447 = vmatprep.subr.bf16.mxu1 %v3384_v0 }
  0x4c   :  { %690 = vmatprep.subr.bf16.mxu0 %v3362_v57 }
  0x4e   :  { %448 = vmatpush1.bf16.msra.mxu1 %v3392_v2 }
  0x4f   :  { %691 = vmatpush1.bf16.msra.mxu0 %v3370_v59  ;;  %449 = vmatprep.subr.bf16.mxu1 %v3416_v4 }
  0x50   :  { %692 = vmatprep.subr.bf16.mxu0 %v3374_v61 }
  0x52   :  { %450 = vmatpush1.bf16.msra.mxu1 %v3418_v5 }
  0x53   :  { %693 = vmatpush1.bf16.msra.mxu0 %v3382_v63  ;;  %1021 = vmatprep.subr.bf16.mxu1 %v3424_v6 }
  0x54   :  { %694 = vmatprep.subr.bf16.mxu0 %v3386_v1 }
  0x57   :  { %695 = vmatpush1.bf16.msra.mxu0 %v3394_v3 }
  0x58   :  { %696 = vmatprep.subr.bf16.mxu0 %v3324_v43 }
  0x5b   :  { %697 = vmatpush1.bf16.msra.mxu0 %v3321_v42 }
  0x5c   :  { %698 = vmatprep.subr.bf16.mxu0 %v3329_v45 }
  0x5f   :  { %699 = vmatpush1.bf16.msra.mxu0 %v3335_v47 }
  0x60   :  { %700 = vmatprep.subr.bf16.mxu0 %v3339_v48 }
  0x63   :  { %701 = vmatpush1.bf16.msra.mxu0 %v3347_v51 }
  0x64   :  { %702 = vmatprep.subr.bf16.mxu0 %v3353_v53 }
  0x67   :  { %703 = vmatpush1.bf16.msra.mxu0 %v3356_v54 }
  0x68   :  { %704 = vmatprep.subr.bf16.mxu0 %v3360_v56 }
  0x6b   :  { %705 = vmatpush1.bf16.msra.mxu0 %v3368_v58 }
  0x6c   :  { %706 = vmatprep.subr.bf16.mxu0 %v3372_v60 }
  0x6f   :  { %707 = vmatpush1.bf16.msra.mxu0 %v3380_v62 }
  0x70   :  { %708 = vmatprep.subr.bf16.mxu0 %v3384_v0 }
  0x73   :  { %709 = vmatpush1.bf16.msra.mxu0 %v3392_v2 }
  0x74   :  { %710 = vmatprep.subr.bf16.mxu0 %v3416_v4 }
  0x77   :  { %711 = vmatpush1.bf16.msra.mxu0 %v3418_v5 }
  0x78   :  { %1403 = vmatprep.subr.bf16.mxu0 %v3424_v6 }
 0x105   :  { %v178_v16 = vpop.f32.mrb[0].mxu0 }
 0x106   :  { %v179_v18 = vadd.f32 %v178_v16, %v81_v14  ;;  %v180_v19 = vpop.f32.mrb[1].mxu0  ;;  %v3500_v14 = vld [vmem:[#allocation6 + $0x60] ss:$8 sps:$4 sm:$0xff]   ;;  %v3508_v16 = vld [vmem:[#allocation6 + $0x70] ss:$8 sps:$4 sm:$0xff]  }
 0x107   :  { %v181_v20 = vadd.f32 %v180_v19, %v85_v15  ;;  %v3503_v15 = vld [vmem:[#allocation6 + $0x74] ss:$8 sps:$4 sm:$0xff]   ;;  %v3132_v19 = vld [vmem:[#allocation6 + $0x130] ss:$8 sps:$4 sm:$0xff]  }
 0x108   :  { %v325_v21 = vmax.f32 %v179_v18, 0.0  ;;  %v249_v22 = vpop.f32.mrb[0].mxu1  ;;  %v3134_v18 = vld [vmem:[#allocation6 + $0x134] ss:$8 sps:$4 sm:$0xff]  }
 0x109   :  { %v326_v23 = vmax.f32 %v181_v20, 0.0  ;;  %v250_v25 = vadd.f32 %v249_v22, %v89_v17  ;;  %v3444_v26 = vpop.f32.mrb[1].mxu1  ;;  %v3137_v20 = vld [vmem:[#allocation6 + $0x144] ss:$8 sps:$4 sm:$0xff]   ;;  %v3140_v22 = vld [vmem:[#allocation6 + $0x154] ss:$8 sps:$4 sm:$0xff]  }
 0x10a   :  { %v3446_v27 = vpack.c.bf16 %v325_v21, %v325_v21  ;;  %v3135_v21 = vld [vmem:[#allocation6 + $0x140] ss:$8 sps:$4 sm:$0xff]  }
 0x10b   :  { %v3448_v28 = vpack.c.bf16 %v326_v23, %v326_v23  ;;  %v327_v30 = vmax.f32 %v250_v25, 0.0  ;;  %v100_v23 = vsub.s32 5, %v3429_v9  ;;  %v3143_v25 = vld [vmem:[#allocation6 + $0x164] ss:$8 sps:$4 sm:$0xff]  }
 0x10c   :  { %468 = vmatmul.mubr.bf16.vlgmr.msra.gmra.mrb[4].mxu1 %v3446_v27 }
 0x10d   :  { %1022 = vmatpush1.bf16.msra.mxu1 %v3442_v24  ;;  %712 = vmatprep.mubr.bf16.mxu0 %v3448_v28  ;;  %v3457_v32 = vpack.c.bf16 %v327_v30, %v327_v30  ;;  %v3510_v17 = vpop.f32.mrb[2].mxu0  ;;  %v3144_v30 = vld [vmem:[#allocation6 + $0x170] ss:$8 sps:$4 sm:$0xff]  }
 0x10e   :  { %1053 = vmatprep.mubr.bf16.mxu1 %v3448_v28  ;;  %713 = vmatmul.mubr.bf16.vlgmr.msra.gmra.mrb[4].mxu0 %v3446_v27 }
 0x10f   :  { %1404 = vmatpush1.bf16.msra.mxu0 %v3442_v24  ;;  %1023 = vmatprep.subr.bf16.mxu1 %v3450_v29 }
 0x110   :  { %1405 = vmatprep.subr.bf16.mxu0 %v3450_v29  ;;  %1435 = vmatprep.mubr.bf16.mxu0 %v3457_v32 }
 0x111   :  { %1024 = vmatpush1.bf16.msra.mxu1 %v3455_v31 }
 0x112   :  { %1025 = vmatprep.subr.bf16.mxu1 %v3461_v33 }
 0x113   :  { %1406 = vmatpush1.bf16.msra.mxu0 %v3455_v31 }
 0x114   :  { %1407 = vmatprep.subr.bf16.mxu0 %v3461_v33 }
 0x115   :  { %1026 = vmatpush1.bf16.msra.mxu1 %v3468_v34 }
 0x116   :  { %1027 = vmatprep.subr.bf16.mxu1 %v3471_v35 }
 0x117   :  { %1408 = vmatpush1.bf16.msra.mxu0 %v3468_v34 }
 0x118   :  { %1409 = vmatprep.subr.bf16.mxu0 %v3471_v35 }
 0x119   :  { %1028 = vmatpush1.bf16.msra.mxu1 %v3476_v36 }
 0x11a   :  { %1029 = vmatprep.subr.bf16.mxu1 %v3479_v37 }
 0x11b   :  { %1410 = vmatpush1.bf16.msra.mxu0 %v3476_v36 }
 0x11c   :  { %1411 = vmatprep.subr.bf16.mxu0 %v3479_v37 }
 0x11d   :  { %1030 = vmatpush1.bf16.msra.mxu1 %v3484_v8 }
 0x11e   :  { %1031 = vmatprep.subr.bf16.mxu1 %v3487_v10 }
 0x11f   :  { %1412 = vmatpush1.bf16.msra.mxu0 %v3484_v8 }
 0x120   :  { %1413 = vmatprep.subr.bf16.mxu0 %v3487_v10 }
 0x121   :  { %1032 = vmatpush1.bf16.msra.mxu1 %v3492_v12 }
 0x122   :  { %1033 = vmatprep.subr.bf16.mxu1 %v3495_v13 }
 0x123   :  { %1414 = vmatpush1.bf16.msra.mxu0 %v3492_v12 }
 0x124   :  { %1415 = vmatprep.subr.bf16.mxu0 %v3495_v13 }
 0x125   :  { %1034 = vmatpush1.bf16.msra.mxu1 %v3500_v14 }
 0x126   :  { %1035 = vmatprep.subr.bf16.mxu1 %v3503_v15 }
 0x127   :  { %1416 = vmatpush1.bf16.msra.mxu0 %v3500_v14 }
 0x128   :  { %1417 = vmatprep.subr.bf16.mxu0 %v3503_v15 }
 0x129   :  { %1036 = vmatpush1.bf16.msra.mxu1 %v3508_v16 }
 0x12a   :  { %1037 = vmatprep.subr.bf16.mxu1 %v3310_v38 }
 0x12b   :  { %1418 = vmatpush1.bf16.msra.mxu0 %v3508_v16 }
 0x12c   :  { %1419 = vmatprep.subr.bf16.mxu0 %v3310_v38  ;;  %v3538_v38 = vpop.f32.mrb[3].mxu0 }
 0x12d   :  { %1038 = vmatpush1.bf16.msra.mxu1 %v3313_v39 }
 0x12e   :  { %1039 = vmatprep.subr.bf16.mxu1 %v3316_v40 }
 0x12f   :  { %1420 = vmatpush1.bf16.msra.mxu0 %v3313_v39  ;;  %v92_v39 = vsub.s32 3, %v3429_v9 }
 0x130   :  { %1421 = vmatprep.subr.bf16.mxu0 %v3316_v40  ;;  %v96_v40 = vsub.s32 4, %v3429_v9  ;;  %v3149_v9 = vld [vmem:[#allocation6 + $0x4] ss:$8 sps:$4 sm:$0xff]  }
 0x131   :  { %1040 = vmatpush1.bf16.msra.mxu1 %v3318_v41 }
 0x132   :  { %1041 = vmatprep.subr.bf16.mxu1 %v3327_v44 }
 0x133   :  { %1422 = vmatpush1.bf16.msra.mxu0 %v3318_v41  ;;  %v93_v41 = vrot.slane %v3435_v11, %v92_v39 }
 0x134   :  { %1423 = vmatprep.subr.bf16.mxu0 %v3327_v44 }
 0x135   :  { %1042 = vmatpush1.bf16.msra.mxu1 %v3331_v46 }
 0x136   :  { %1043 = vmatprep.subr.bf16.mxu1 %v3342_v49 }
 0x137   :  { %1424 = vmatpush1.bf16.msra.mxu0 %v3331_v46 }
 0x138   :  { %1425 = vmatprep.subr.bf16.mxu0 %v3342_v49  ;;  %v3629_v49 = vld [vmem:[#allocation6 + $0x84] ss:$8 sps:$4 sm:$0xff]  }
 0x139   :  { %1044 = vmatpush1.bf16.msra.mxu1 %v3344_v50 }
 0x13a   :  { %1045 = vmatprep.subr.bf16.mxu1 %v3350_v52 }
 0x13b   :  { %1426 = vmatpush1.bf16.msra.mxu0 %v3344_v50  ;;  %v3634_v50 = vld [vmem:[#allocation6 + $0x80] ss:$8 sps:$4 sm:$0xff]  }
 0x13c   :  { %1427 = vmatprep.subr.bf16.mxu0 %v3350_v52  ;;  %v3642_v52 = vld [vmem:[#allocation6 + $0x90] ss:$8 sps:$4 sm:$0xff]  }
 0x13d   :  { %1046 = vmatpush1.bf16.msra.mxu1 %v3358_v55 }
 0x13e   :  { %1047 = vmatprep.subr.bf16.mxu1 %v3362_v57 }
 0x13f   :  { %1428 = vmatpush1.bf16.msra.mxu0 %v3358_v55  ;;  %v3653_v55 = vld [vmem:[#allocation6 + $0xb4] ss:$8 sps:$4 sm:$0xff]  }
 0x140   :  { %1429 = vmatprep.subr.bf16.mxu0 %v3362_v57  ;;  %v3661_v57 = vld [vmem:[#allocation6 + $0xc4] ss:$8 sps:$4 sm:$0xff]  }
 0x141   :  { %1048 = vmatpush1.bf16.msra.mxu1 %v3370_v59 }
 0x142   :  { %1049 = vmatprep.subr.bf16.mxu1 %v3374_v61 }
 0x143   :  { %1430 = vmatpush1.bf16.msra.mxu0 %v3370_v59  ;;  %v3669_v59 = vld [vmem:[#allocation6 + $0xd4] ss:$8 sps:$4 sm:$0xff]  }
 0x144   :  { %1431 = vmatprep.subr.bf16.mxu0 %v3374_v61  ;;  %v3677_v61 = vld [vmem:[#allocation6 + $0xe4] ss:$8 sps:$4 sm:$0xff]  }
 0x145   :  { %1050 = vmatpush1.bf16.msra.mxu1 %v3382_v63 }
 0x146   :  { %1051 = vmatprep.subr.bf16.mxu1 %v3386_v1 }
 0x147   :  { %1432 = vmatpush1.bf16.msra.mxu0 %v3382_v63  ;;  %v3685_v63 = vld [vmem:[#allocation6 + $0xf4] ss:$8 sps:$4 sm:$0xff]  }
 0x148   :  { %1433 = vmatprep.subr.bf16.mxu0 %v3386_v1  ;;  %v3125_v1 = vld [vmem:[#allocation6 + $0x104] ss:$8 sps:$4 sm:$0xff]  }
 0x149   :  { %1052 = vmatpush1.bf16.msra.mxu1 %v3394_v3 }
 0x14a   :  { %1062 = vmatprep.subr.bf16.mxu1 %v3324_v43 }
 0x14b   :  { %1434 = vmatpush1.bf16.msra.mxu0 %v3394_v3  ;;  %v3128_v3 = vld [vmem:[#allocation6 + $0x114] ss:$8 sps:$4 sm:$0xff]  }
 0x14c   :  { %1054 = vmatmul.mubr.bf16.vlgmr.msra.gmra.mrb[8].mxu1 %v3446_v27  ;;  %1444 = vmatprep.subr.bf16.mxu0 %v3324_v43  ;;  %v252_v43 = vadd.f32 %v3444_v26, %v93_v41  ;;  %v101_v26 = vrot.slane %v3435_v11, %v100_v23  ;;  %v3141_v27 = vld [vmem:[#allocation6 + $0x160] ss:$8 sps:$4 sm:$0xff]  }
 0x14d   :  { %1063 = vmatpush1.bf16.msra.mxu1 %v3321_v42  ;;  %1094 = vmatprep.mubr.bf16.mxu1 %v3250_v7 }
 0x14e   :  { %1436 = vmatmul.mubr.bf16.vlgmr.msra.gmra.mrb[8].mxu0 %v3448_v28  ;;  %1064 = vmatprep.subr.bf16.mxu1 %v3329_v45  ;;  %v3146_v28 = vld [vmem:[#allocation6 + $0x174] ss:$8 sps:$4 sm:$0xff]  }
 0x14f   :  { %1445 = vmatpush1.bf16.msra.mxu0 %v3321_v42  ;;  %1476 = vmatprep.mubr.bf16.mxu0 %v3250_v7  ;;  %v97_v42 = vrot.slane %v3435_v11, %v96_v40  ;;  %v3152_v11 = vld [vmem:[#allocation6 + $0x14] ss:$8 sps:$4 sm:$0xff]  }
 0x150   :  { %1446 = vmatprep.subr.bf16.mxu0 %v3329_v45  ;;  %v328_v45 = vmax.f32 %v252_v43, 0.0 }
 0x151   :  { %1065 = vmatpush1.bf16.msra.mxu1 %v3335_v47  ;;  %v321_v44 = vadd.f32 %v3510_v17, %v97_v42  ;;  %v3165_v42 = vld [vmem:[#allocation6 + $0x60] ss:$8 sps:$4 sm:$0xff]  }
 0x152   :  { %1066 = vmatprep.subr.bf16.mxu1 %v3339_v48 }
 0x153   :  { %1447 = vmatpush1.bf16.msra.mxu0 %v3335_v47  ;;  %v329_v46 = vmax.f32 %v321_v44, 0.0  ;;  %v3591_v47 = vpack.c.bf16 %v328_v45, %v328_v45 }
 0x154   :  { %1448 = vmatprep.subr.bf16.mxu0 %v3339_v48 }
 0x155   :  { %1067 = vmatpush1.bf16.msra.mxu1 %v3347_v51  ;;  %v3596_v48 = vpack.c.bf16 %v329_v46, %v329_v46  ;;  %v3170_v46 = vld [vmem:[#allocation6 + $0x74] ss:$8 sps:$4 sm:$0xff]  }
 0x156   :  { %1068 = vmatprep.subr.bf16.mxu1 %v3353_v53 }
 0x157   :  { %1449 = vmatpush1.bf16.msra.mxu0 %v3347_v51  ;;  %v3637_v51 = vld [vmem:[#allocation6 + $0x94] ss:$8 sps:$4 sm:$0xff]  }
 0x158   :  { %1450 = vmatprep.subr.bf16.mxu0 %v3353_v53  ;;  %v3645_v53 = vld [vmem:[#allocation6 + $0xa4] ss:$8 sps:$4 sm:$0xff]  }
 0x159   :  { %1069 = vmatpush1.bf16.msra.mxu1 %v3356_v54 }
 0x15a   :  { %1070 = vmatprep.subr.bf16.mxu1 %v3360_v56 }
 0x15b   :  { %1451 = vmatpush1.bf16.msra.mxu0 %v3356_v54  ;;  %v3650_v54 = vld [vmem:[#allocation6 + $0xa0] ss:$8 sps:$4 sm:$0xff]  }
 0x15c   :  { %1452 = vmatprep.subr.bf16.mxu0 %v3360_v56  ;;  %v3658_v56 = vld [vmem:[#allocation6 + $0xb0] ss:$8 sps:$4 sm:$0xff]  }
 0x15d   :  { %1071 = vmatpush1.bf16.msra.mxu1 %v3368_v58 }
 0x15e   :  { %1072 = vmatprep.subr.bf16.mxu1 %v3372_v60 }
 0x15f   :  { %1453 = vmatpush1.bf16.msra.mxu0 %v3368_v58  ;;  %v3666_v58 = vld [vmem:[#allocation6 + $0xc0] ss:$8 sps:$4 sm:$0xff]  }
 0x160   :  { %1454 = vmatprep.subr.bf16.mxu0 %v3372_v60  ;;  %v3674_v60 = vld [vmem:[#allocation6 + $0xd0] ss:$8 sps:$4 sm:$0xff]  }
 0x161   :  { %1073 = vmatpush1.bf16.msra.mxu1 %v3380_v62 }
 0x162   :  { %1074 = vmatprep.subr.bf16.mxu1 %v3384_v0 }
 0x163   :  { %1455 = vmatpush1.bf16.msra.mxu0 %v3380_v62  ;;  %v3682_v62 = vld [vmem:[#allocation6 + $0xe0] ss:$8 sps:$4 sm:$0xff]  }
 0x164   :  { %1456 = vmatprep.subr.bf16.mxu0 %v3384_v0  ;;  %v3690_v0 = vld [vmem:[#allocation6 + $0xf0] ss:$8 sps:$4 sm:$0xff]  }
 0x165   :  { %1075 = vmatpush1.bf16.msra.mxu1 %v3392_v2 }
 0x166   :  { %1076 = vmatprep.subr.bf16.mxu1 %v3416_v4 }
 0x167   :  { %1457 = vmatpush1.bf16.msra.mxu0 %v3392_v2  ;;  %v3123_v2 = vld [vmem:[#allocation6 + $0x100] ss:$8 sps:$4 sm:$0xff]  }
 0x168   :  { %1458 = vmatprep.subr.bf16.mxu0 %v3416_v4  ;;  %v3126_v4 = vld [vmem:[#allocation6 + $0x110] ss:$8 sps:$4 sm:$0xff]  }
 0x169   :  { %1077 = vmatpush1.bf16.msra.mxu1 %v3418_v5 }
 0x16a   :  { %1785 = vmatprep.subr.bf16.mxu1 %v3424_v6 }
 0x16b   :  { %1459 = vmatpush1.bf16.msra.mxu0 %v3418_v5  ;;  %v3131_v5 = vld [vmem:[#allocation6 + $0x124] ss:$8 sps:$4 sm:$0xff]  }
 0x16c   :  { %1095 = vmatmul.mubr.bf16.vlgmr.msra.gmra.mrb[8].mxu1 %v3457_v32  ;;  %2167 = vmatprep.subr.bf16.mxu0 %v3424_v6  ;;  %v3129_v6 = vld [vmem:[#allocation6 + $0x120] ss:$8 sps:$4 sm:$0xff]  }
 0x16d   :  { %1786 = vmatpush1.bf16.msra.mxu1 %v3442_v24  ;;  %1817 = vmatprep.mubr.bf16.mxu1 %v3591_v47 }
 0x16e   :  { %1477 = vmatmul.mubr.bf16.vlgmr.msra.gmra.mrb[8].mxu0 %v3591_v47  ;;  %1787 = vmatprep.subr.bf16.mxu1 %v3450_v29 }
 0x16f   :  { %2168 = vmatpush1.bf16.msra.mxu0 %v3442_v24  ;;  %2199 = vmatprep.mubr.bf16.mxu0 %v3596_v48  ;;  %v3138_v24 = vld [vmem:[#allocation6 + $0x150] ss:$8 sps:$4 sm:$0xff]  }
 0x170   :  { %2169 = vmatprep.subr.bf16.mxu0 %v3450_v29  ;;  %v323_v29 = vadd.f32 %v3538_v38, %v101_v26 }
 0x171   :  { %1788 = vmatpush1.bf16.msra.mxu1 %v3455_v31 }
 0x172   :  { %1789 = vmatprep.subr.bf16.mxu1 %v3461_v33 }
 0x173   :  { %2170 = vmatpush1.bf16.msra.mxu0 %v3455_v31  ;;  %v330_v31 = vmax.f32 %v323_v29, 0.0 }
 0x174   :  { %2171 = vmatprep.subr.bf16.mxu0 %v3461_v33 }
 0x175   :  { %1790 = vmatpush1.bf16.msra.mxu1 %v3468_v34  ;;  %v3704_v33 = vpack.c.bf16 %v330_v31, %v330_v31 }
 0x176   :  { %1791 = vmatprep.subr.bf16.mxu1 %v3471_v35 }
 0x177   :  { %2172 = vmatpush1.bf16.msra.mxu0 %v3468_v34  ;;  %v3150_v34 = vld [vmem:[#allocation6 + $0x10] ss:$8 sps:$4 sm:$0xff]  }
 0x178   :  { %2173 = vmatprep.subr.bf16.mxu0 %v3471_v35  ;;  %v3155_v35 = vld [vmem:[#allocation6 + $0x24] ss:$8 sps:$4 sm:$0xff]  }
 0x179   :  { %1792 = vmatpush1.bf16.msra.mxu1 %v3476_v36 }
 0x17a   :  { %1793 = vmatprep.subr.bf16.mxu1 %v3479_v37 }
 0x17b   :  { %2174 = vmatpush1.bf16.msra.mxu0 %v3476_v36  ;;  %v3153_v36 = vld [vmem:[#allocation6 + $0x20] ss:$8 sps:$4 sm:$0xff]  }
 0x17c   :  { %2175 = vmatprep.subr.bf16.mxu0 %v3479_v37  ;;  %v3158_v37 = vld [vmem:[#allocation6 + $0x34] ss:$8 sps:$4 sm:$0xff]  }
 0x17d   :  { %1794 = vmatpush1.bf16.msra.mxu1 %v3484_v8 }
 0x17e   :  { %1795 = vmatprep.subr.bf16.mxu1 %v3487_v10 }
 0x17f   :  { %2176 = vmatpush1.bf16.msra.mxu0 %v3484_v8  ;;  %v3156_v8 = vld [vmem:[#allocation6 + $0x30] ss:$8 sps:$4 sm:$0xff]  }
 0x180   :  { %2177 = vmatprep.subr.bf16.mxu0 %v3487_v10  ;;  %v3161_v10 = vld [vmem:[#allocation6 + $0x44] ss:$8 sps:$4 sm:$0xff]  }
 0x181   :  { %1796 = vmatpush1.bf16.msra.mxu1 %v3492_v12 }
 0x182   :  { %1797 = vmatprep.subr.bf16.mxu1 %v3495_v13 }
 0x183   :  { %2178 = vmatpush1.bf16.msra.mxu0 %v3492_v12  ;;  %v3159_v12 = vld [vmem:[#allocation6 + $0x40] ss:$8 sps:$4 sm:$0xff]  }
 0x184   :  { %2179 = vmatprep.subr.bf16.mxu0 %v3495_v13  ;;  %v3164_v13 = vld [vmem:[#allocation6 + $0x54] ss:$8 sps:$4 sm:$0xff]  }
 0x185   :  { %1798 = vmatpush1.bf16.msra.mxu1 %v3500_v14 }
 0x186   :  { %1799 = vmatprep.subr.bf16.mxu1 %v3503_v15 }
 0x187   :  { %2180 = vmatpush1.bf16.msra.mxu0 %v3500_v14  ;;  %v3162_v14 = vld [vmem:[#allocation6 + $0x50] ss:$8 sps:$4 sm:$0xff]  }
 0x188   :  { %2181 = vmatprep.subr.bf16.mxu0 %v3503_v15  ;;  %v3167_v15 = vld [vmem:[#allocation6 + $0x64] ss:$8 sps:$4 sm:$0xff]  }
 0x189   :  { %1800 = vmatpush1.bf16.msra.mxu1 %v3508_v16 }
 0x18a   :  { %1801 = vmatprep.subr.bf16.mxu1 %v3629_v49 }
 0x18b   :  { %2182 = vmatpush1.bf16.msra.mxu0 %v3508_v16 }
 0x18c   :  { %2183 = vmatprep.subr.bf16.mxu0 %v3629_v49 }
 0x18d   :  { %1802 = vmatpush1.bf16.msra.mxu1 %v3634_v50 }
 0x18e   :  { %1803 = vmatprep.subr.bf16.mxu1 %v3637_v51 }
 0x18f   :  { %2184 = vmatpush1.bf16.msra.mxu0 %v3634_v50 }
 0x190   :  { %2185 = vmatprep.subr.bf16.mxu0 %v3637_v51 }
 0x191   :  { %1804 = vmatpush1.bf16.msra.mxu1 %v3642_v52 }
 0x192   :  { %1805 = vmatprep.subr.bf16.mxu1 %v3645_v53 }
 0x193   :  { %2186 = vmatpush1.bf16.msra.mxu0 %v3642_v52 }
 0x194   :  { %2187 = vmatprep.subr.bf16.mxu0 %v3645_v53 }
 0x195   :  { %1806 = vmatpush1.bf16.msra.mxu1 %v3650_v54 }
 0x196   :  { %1807 = vmatprep.subr.bf16.mxu1 %v3653_v55 }
 0x197   :  { %2188 = vmatpush1.bf16.msra.mxu0 %v3650_v54 }
 0x198   :  { %2189 = vmatprep.subr.bf16.mxu0 %v3653_v55 }
 0x199   :  { %1808 = vmatpush1.bf16.msra.mxu1 %v3658_v56 }
 0x19a   :  { %1809 = vmatprep.subr.bf16.mxu1 %v3661_v57 }
 0x19b   :  { %2190 = vmatpush1.bf16.msra.mxu0 %v3658_v56 }
 0x19c   :  { %2191 = vmatprep.subr.bf16.mxu0 %v3661_v57 }
 0x19d   :  { %1810 = vmatpush1.bf16.msra.mxu1 %v3666_v58 }
 0x19e   :  { %1811 = vmatprep.subr.bf16.mxu1 %v3669_v59 }
 0x19f   :  { %2192 = vmatpush1.bf16.msra.mxu0 %v3666_v58 }
 0x1a0   :  { %2193 = vmatprep.subr.bf16.mxu0 %v3669_v59 }
 0x1a1   :  { %1812 = vmatpush1.bf16.msra.mxu1 %v3674_v60 }
 0x1a2   :  { %1813 = vmatprep.subr.bf16.mxu1 %v3677_v61 }
 0x1a3   :  { %2194 = vmatpush1.bf16.msra.mxu0 %v3674_v60 }
 0x1a4   :  { %2195 = vmatprep.subr.bf16.mxu0 %v3677_v61 }
 0x1a5   :  { %1814 = vmatpush1.bf16.msra.mxu1 %v3682_v62 }
 0x1a6   :  { %1815 = vmatprep.subr.bf16.mxu1 %v3685_v63 }
 0x1a7   :  { %2196 = vmatpush1.bf16.msra.mxu0 %v3682_v62 }
 0x1a8   :  { %2197 = vmatprep.subr.bf16.mxu0 %v3685_v63 }
 0x1a9   :  { %1816 = vmatpush1.bf16.msra.mxu1 %v3690_v0 }
 0x1aa   :  { %1826 = vmatprep.subr.bf16.mxu1 %v3125_v1 }
 0x1ab   :  { %2198 = vmatpush1.bf16.msra.mxu0 %v3690_v0 }
 0x1ac   :  { %1818 = vmatmul.mubr.bf16.vlgmr.msra.gmra.mrb[12].mxu1 %v3457_v32  ;;  %2208 = vmatprep.subr.bf16.mxu0 %v3125_v1  ;;  %v3147_v32 = vld [vmem:[#allocation6] ss:$8 sps:$4 sm:$0xff]  }
 0x1ad   :  { %1827 = vmatpush1.bf16.msra.mxu1 %v3123_v2  ;;  %1858 = vmatprep.mubr.bf16.mxu1 %v3250_v7 }
 0x1ae   :  { %2200 = vmatmul.mubr.bf16.vlgmr.msra.gmra.mrb[12].mxu0 %v3591_v47  ;;  %1828 = vmatprep.subr.bf16.mxu1 %v3128_v3 }
 0x1af   :  { %2209 = vmatpush1.bf16.msra.mxu0 %v3123_v2  ;;  %2240 = vmatprep.mubr.bf16.mxu0 %v3250_v7 }
 0x1b0   :  { %2210 = vmatprep.subr.bf16.mxu0 %v3128_v3 }
 0x1b1   :  { %1829 = vmatpush1.bf16.msra.mxu1 %v3126_v4 }
 0x1b2   :  { %1830 = vmatprep.subr.bf16.mxu1 %v3131_v5 }
 0x1b3   :  { %2211 = vmatpush1.bf16.msra.mxu0 %v3126_v4 }
 0x1b4   :  { %2212 = vmatprep.subr.bf16.mxu0 %v3131_v5  ;;  %v3168_v5 = vld [vmem:[#allocation6 + $0x70] ss:$8 sps:$4 sm:$0xff]  }
 0x1b5   :  { %1831 = vmatpush1.bf16.msra.mxu1 %v3129_v6 }
 0x1b6   :  { %1832 = vmatprep.subr.bf16.mxu1 %v3134_v18 }
 0x1b7   :  { %2213 = vmatpush1.bf16.msra.mxu0 %v3129_v6 }
 0x1b8   :  { %2214 = vmatprep.subr.bf16.mxu0 %v3134_v18 }
 0x1b9   :  { %1833 = vmatpush1.bf16.msra.mxu1 %v3132_v19 }
 0x1ba   :  { %1834 = vmatprep.subr.bf16.mxu1 %v3137_v20 }
 0x1bb   :  { %2215 = vmatpush1.bf16.msra.mxu0 %v3132_v19 }
 0x1bc   :  { %2216 = vmatprep.subr.bf16.mxu0 %v3137_v20 }
 0x1bd   :  { %1835 = vmatpush1.bf16.msra.mxu1 %v3135_v21 }
 0x1be   :  { %1836 = vmatprep.subr.bf16.mxu1 %v3140_v22 }
 0x1bf   :  { %2217 = vmatpush1.bf16.msra.mxu0 %v3135_v21 }
 0x1c0   :  { %2218 = vmatprep.subr.bf16.mxu0 %v3140_v22 }
 0x1c1   :  { %1837 = vmatpush1.bf16.msra.mxu1 %v3138_v24 }
 0x1c2   :  { %1838 = vmatprep.subr.bf16.mxu1 %v3143_v25 }
 0x1c3   :  { %2219 = vmatpush1.bf16.msra.mxu0 %v3138_v24 }
 0x1c4   :  { %2220 = vmatprep.subr.bf16.mxu0 %v3143_v25 }
 0x1c5   :  { %1839 = vmatpush1.bf16.msra.mxu1 %v3141_v27 }
 0x1c6   :  { %1840 = vmatprep.subr.bf16.mxu1 %v3146_v28 }
 0x1c7   :  { %2221 = vmatpush1.bf16.msra.mxu0 %v3141_v27 }
 0x1c8   :  { %2222 = vmatprep.subr.bf16.mxu0 %v3146_v28 }
 0x1c9   :  { %1841 = vmatpush1.bf16.msra.mxu1 %v3144_v30 }
 0x1ca   :  { %2453 = vmatprep.subr.bf16.mxu1 %v3149_v9 }
 0x1cb   :  { %2223 = vmatpush1.bf16.msra.mxu0 %v3144_v30 }
 0x1cc   :  { %1859 = vmatmul.mubr.bf16.vlgmr.msra.gmra.mrb[12].mxu1 %v3596_v48  ;;  %2602 = vmatprep.subr.bf16.mxu0 %v3149_v9 }
 0x1cd   :  { %2454 = vmatpush1.bf16.msra.mxu1 %v3147_v32  ;;  %2485 = vmatprep.mubr.bf16.mxu1 %v3704_v33 }
 0x1ce   :  { %2241 = vmatmul.mubr.bf16.vlgmr.msra.gmra.mrb[12].mxu0 %v3704_v33  ;;  %2455 = vmatprep.subr.bf16.mxu1 %v3152_v11 }
 0x1cf   :  { %2603 = vmatpush1.bf16.msra.mxu0 %v3147_v32  ;;  %2634 = vmatprep.mubr.bf16.mxu0 %v3250_v7  ;;  %v3713_v7 = vstv %s3765_s4  ;;  %s3251_s4 = smov [#allocation8]  }
 0x1d0   :  { %2604 = vmatprep.subr.bf16.mxu0 %v3152_v11  ;;  %s2661_s23 = sshll.u32 %s3251_s4, 4  ;;  %s2662_s23 = int_to_ptr.vmem [resolvable:$true] %s2661_s23 }
 0x1d1   :  { %2456 = vmatpush1.bf16.msra.mxu1 %v3150_v34  ;;  %s3215_s24 = scalar_lea.vmem %s2662_s23, 512  ;;  %p3220_p3 = scmp.lt.s32.totalorder %s2662_s23, %s2662_s23 }
 0x1d2   :  { %2457 = vmatprep.subr.bf16.mxu1 %v3155_v35  ;;  %p3216_p2 = scmp.ne.s32.totalorder %s2662_s23, %s3215_s24  ;;  %p3221_p4 = scmp.lt.s32.totalorder %s3215_s24, %s3215_s24 }
 0x1d3   :  { %2605 = vmatpush1.bf16.msra.mxu0 %v3150_v34 }
 0x1d4   :  { %2606 = vmatprep.subr.bf16.mxu0 %v3155_v35  ;;  %p3222_p5 = por %p3221_p4, %p3220_p3 }
 0x1d5   :  { %2458 = vmatpush1.bf16.msra.mxu1 %v3153_v36 }
 0x1d6   :  { %2459 = vmatprep.subr.bf16.mxu1 %v3158_v37  ;;  %p3223_p6 = pnand %p3222_p5, %p3216_p2 }
 0x1d7   :  { %2607 = vmatpush1.bf16.msra.mxu0 %v3153_v36 }
 0x1d8   :  { %2608 = vmatprep.subr.bf16.mxu0 %v3158_v37 }
 0x1d9   :  { %2460 = vmatpush1.bf16.msra.mxu1 %v3156_v8 }
 0x1da   :  { %2461 = vmatprep.subr.bf16.mxu1 %v3161_v10 }
 0x1db   :  { %2609 = vmatpush1.bf16.msra.mxu0 %v3156_v8 }
 0x1dc   :  { %2610 = vmatprep.subr.bf16.mxu0 %v3161_v10 }
 0x1dd   :  { %2462 = vmatpush1.bf16.msra.mxu1 %v3159_v12 }
 0x1de   :  { %2463 = vmatprep.subr.bf16.mxu1 %v3164_v13 }
 0x1df   :  { %2611 = vmatpush1.bf16.msra.mxu0 %v3159_v12  ;;  %v469_v16 = vpop.f32.mrb[4].mxu1 }
 0x1e0   :  { %v470_v17 = vadd.f32 %v469_v16, %v3713_v7  ;;  %v471_v38 = vpop.f32.mrb[5].mxu1  ;;  %2612 = vmatprep.subr.bf16.mxu0 %v3164_v13 }
 0x1e1   :  { %v472_v39 = vadd.f32 %v471_v38, %v3713_v7  ;;  %2464 = vmatpush1.bf16.msra.mxu1 %v3162_v14  ;;  %v473_v40 = vpop.f32.mrb[6].mxu1  ;;  %v714_v41 = vpop.f32.mrb[4].mxu0 }
 0x1e2   :  { %v715_v43 = vadd.f32 %v714_v41, %v3713_v7  ;;  %v474_v44 = vpop.f32.mrb[7].mxu1  ;;  %v716_v45 = vpop.f32.mrb[5].mxu0  ;;  %2465 = vmatprep.subr.bf16.mxu1 %v3167_v15 }
 0x1e3   :  { %v478_v47 = vcombine.low %v470_v17, %v472_v39  ;;  %v717_v1 = vadd.f32 %v716_v45, %v3713_v7  ;;  %2613 = vmatpush1.bf16.msra.mxu0 %v3162_v14  ;;  %v718_v2 = vpop.f32.mrb[6].mxu0 }
 0x1e4   :  { %v719_v3 = vpop.f32.mrb[7].mxu0  ;;  %2614 = vmatprep.subr.bf16.mxu0 %v3167_v15 }
 0x1e5   :  { %2690 = vst.sshfl [vmem:[#allocation8] sm:$0x33 pattern:$0x76325410] %v478_v47  ;;  %v723_v4 = vcombine.low %v715_v43, %v717_v1  ;;  %2466 = vmatpush1.bf16.msra.mxu1 %v3165_v42 }
 0x1e6   :  { %2467 = vmatprep.subr.bf16.mxu1 %v3170_v46 }
 0x1e7   :  { %2723 = vst.sshfl [vmem:[#allocation8 + $0x4] sm:$0x33 pattern:$0x76325410] %v723_v4  ;;  %2615 = vmatpush1.bf16.msra.mxu0 %v3165_v42 }
 0x1e8   :  { %2616 = vmatprep.subr.bf16.mxu0 %v3170_v46 }
 0x1e9   :  { %2468 = vmatpush1.bf16.msra.mxu1 %v3168_v5 }
 0x1ea   :  { %2469 = vmatprep.subr.bf16.mxu1 %v3629_v49 }
 0x1eb   :  { %2617 = vmatpush1.bf16.msra.mxu0 %v3168_v5 }
 0x1ed   :  { %2470 = vmatpush1.bf16.msra.mxu1 %v3634_v50 }
 0x1ee   :  { %2635 = vmatmul.mubr.bf16.vlgmr.msra.gmra.mrb[16].mxu0 %v3704_v33  ;;  %2471 = vmatprep.subr.bf16.mxu1 %v3637_v51 }
 0x1f1   :  { %2472 = vmatpush1.bf16.msra.mxu1 %v3642_v52 }
 0x1f2   :  { %2473 = vmatprep.subr.bf16.mxu1 %v3645_v53 }
 0x1f5   :  { %2474 = vmatpush1.bf16.msra.mxu1 %v3650_v54 }
 0x1f6   :  { %2475 = vmatprep.subr.bf16.mxu1 %v3653_v55 }
 0x1f9   :  { %2476 = vmatpush1.bf16.msra.mxu1 %v3658_v56 }
 0x1fa   :  { %2477 = vmatprep.subr.bf16.mxu1 %v3661_v57 }
 0x1fd   :  { %2478 = vmatpush1.bf16.msra.mxu1 %v3666_v58 }
 0x1fe   :  { %2479 = vmatprep.subr.bf16.mxu1 %v3669_v59 }
 0x201   :  { %2480 = vmatpush1.bf16.msra.mxu1 %v3674_v60 }
 0x202   :  { %2481 = vmatprep.subr.bf16.mxu1 %v3677_v61 }
 0x205   :  { %2482 = vmatpush1.bf16.msra.mxu1 %v3682_v62 }
 0x206   :  { %2483 = vmatprep.subr.bf16.mxu1 %v3685_v63 }
 0x209   :  { %2484 = vmatpush1.bf16.msra.mxu1 %v3690_v0 }
 0x20c   :  { %2486 = vmatmul.mubr.bf16.vlgmr.msra.gmra.mrb[16].mxu1 %v3596_v48 }
 0x23f   :  { %v1096_v49 = vpop.f32.mrb[8].mxu1 }
 0x240   :  { %v2994_v50 = vadd.f32 %v1096_v49, %v3713_v7  ;;  %v1098_v51 = vpop.f32.mrb[9].mxu1 }
 0x241   :  { %v2995_v52 = vadd.f32 %v1098_v51, %v3713_v7  ;;  %v1100_v53 = vpop.f32.mrb[10].mxu1  ;;  %v1478_v54 = vpop.f32.mrb[8].mxu0 }
 0x242   :  { %v2996_v55 = vadd.f32 %v1478_v54, %v3713_v7  ;;  %v1101_v56 = vpop.f32.mrb[11].mxu1  ;;  %v1480_v57 = vpop.f32.mrb[9].mxu0 }
 0x243   :  { %v1105_v58 = vcombine.low %v2994_v50, %v2995_v52  ;;  %v2997_v59 = vadd.f32 %v1480_v57, %v3713_v7  ;;  %v1482_v60 = vpop.f32.mrb[10].mxu0 }
 0x244   :  { %v1483_v61 = vpop.f32.mrb[11].mxu0 }
 0x245   :  { %2772 = vst.sshfl [vmem:[#allocation8 + $0x8] sm:$0x33 pattern:$0x76325410] %v1105_v58  ;;  %v1487_v62 = vcombine.low %v2996_v55, %v2997_v59 }
 0x247   :  { %2821 = vst.sshfl [vmem:[#allocation8 + $0xc] sm:$0x33 pattern:$0x76325410] %v1487_v62 }
 0x29f   :  { %v1860_v48 = vpop.f32.mrb[12].mxu1 }
 0x2a0   :  { %v2998_v63 = vadd.f32 %v1860_v48, %v3713_v7  ;;  %v1862_v0 = vpop.f32.mrb[13].mxu1 }
 0x2a1   :  { %v2999_v6 = vadd.f32 %v1862_v0, %v3713_v7  ;;  %v1864_v18 = vpop.f32.mrb[14].mxu1  ;;  %v2242_v19 = vpop.f32.mrb[12].mxu0 }
 0x2a2   :  { %v3000_v20 = vadd.f32 %v2242_v19, %v3713_v7  ;;  %v1865_v21 = vpop.f32.mrb[15].mxu1  ;;  %v2244_v22 = vpop.f32.mrb[13].mxu0 }
 0x2a3   :  { %v1869_v23 = vcombine.low %v2998_v63, %v2999_v6  ;;  %v3001_v24 = vadd.f32 %v2244_v22, %v3713_v7  ;;  %v2246_v25 = vpop.f32.mrb[14].mxu0 }
 0x2a4   :  { %v2247_v26 = vpop.f32.mrb[15].mxu0 }
 0x2a5   :  { %2870 = vst.sshfl [vmem:[#allocation8 + $0x10] sm:$0x33 pattern:$0x76325410] %v1869_v23  ;;  %v2251_v27 = vcombine.low %v3000_v20, %v3001_v24 }
 0x2a7   :  { %2919 = vst.sshfl [vmem:[#allocation8 + $0x14] sm:$0x33 pattern:$0x76325410] %v2251_v27 }
 0x2c1   :  { %v2636_v28 = vpop.f32.mrb[16].mxu0 }
 0x2c2   :  { %v2637_v29 = vadd.f32 %v2636_v28, %v3713_v7  ;;  %v2638_v30 = vpop.f32.mrb[17].mxu0 }
 0x2c3   :  { %v2639_v9 = vadd.f32 %v2638_v30, %v3713_v7  ;;  %v2640_v31 = vpop.f32.mrb[18].mxu0 }
 0x2c4   :  { %v2641_v32 = vpop.f32.mrb[19].mxu0 }
 0x2c5   :  { %v2645_v11 = vcombine.low %v2637_v29, %v2639_v9 }
 0x2c7   :  { %2969 = vst.sshfl [vmem:[#allocation8 + $0x1c] sm:$0x33 pattern:$0x76325410] %v2645_v11 }
 0x2df   :  { %v2487_v33 = vpop.f32.mrb[16].mxu1 }
 0x2e0   :  { %v2488_v34 = vadd.f32 %v2487_v33, %v3713_v7  ;;  %v2489_v35 = vpop.f32.mrb[17].mxu1 }
 0x2e1   :  { %v2490_v36 = vadd.f32 %v2489_v35, %v3713_v7  ;;  %v2491_v37 = vpop.f32.mrb[18].mxu1 }
 0x2e2   :  { %v2492_v8 = vpop.f32.mrb[19].mxu1 }
 0x2e3   :  { %v2496_v10 = vcombine.low %v2488_v34, %v2490_v36 }
 0x2e5   :  { %2952 = vst.sshfl [vmem:[#allocation8 + $0x18] sm:$0x33 pattern:$0x76325410] %v2496_v10 }
 0x2e6   :  { %3226 = shalt.err (!%p3223_p6)
}
 0x2e7   :  { %s3227_s27 = scalar_lea.hbm %s3766_s5, 512 }
 0x2e8   :  { %p3228_p7 = scmp.ne.s32.totalorder %s3766_s5, %s3227_s27  ;;  %p3231_p8 = scmp.lt.u32.totalorder %s3227_s27, %s3766_s5 }
 0x2ea   :  { %p3233_p9 = pnand %p3231_p8, %p3228_p7 }
 0x2ec   :  { %3236 = shalt.err (!%p3233_p9)
}
 0x2ed   :  { %2664 = dma.vmem_to_hbm [thread:$0]  %s2662_s23, 512, %s3766_s5, [#allocation5]  }
 0x2ee   :  { %3241 = dma.done.wait [#allocation5], 512  }
 0x2ef   :  { %3242 = vsyncadd [#allocation5], 4294966784 }
 0x2f0   :  { %2668 = vsyncpa [#allocation4], 1 }
 0x2f1   :  { %2669 = vsyncpa [#allocation7], 1 }
 0x2f2   :  { %2670 = vsyncpa [#allocation5], 1 }

</bundles_post_ra>
